<compile_context>
chip_gen: v7x
topology: tpu7x:2x2x1
jax: 0.10.0
libtpu: 0.0.40
codegen_flags: <defaults>
</compile_context>

<pallas_src>
import jax
import jax.numpy as jnp
from jax.experimental import pallas as pl
from jax.experimental.pallas import tpu as pltpu

HIDDEN = 256
OUT_DIMS = (121, 54, 5, 102)        # fc2, fc2_aux1, fc2_aux2, fc2_aux3
OUT_PAD = 128                        # each head's output padded to 128 lanes
NUM_HEADS = 4
H_ALL = NUM_HEADS * HIDDEN           # 1024 (fused hidden width)
O_ALL = NUM_HEADS * OUT_PAD          # 512  (fused, lane-dense output width)


def _round_up(x, m):
    return ((x + m - 1) // m) * m


def _cdiv(a, b):
    return -(-a // b)


def _vmem_capacity_bytes():
    try:
        return int(pltpu.get_tpu_info().vmem_capacity_bytes)
    except Exception:
        return 64 << 20   # smallest of v5e/v6e/v7x (v7x per-TC VMEM)


def _vmem_estimate(tb, feat, out_itemsize):
    x_tile = tb * feat * 4                              # f32 x tile
    o_tile = tb * O_ALL * out_itemsize
    weights = (feat * H_ALL * 2 + H_ALL * 4             # W1 bf16 + b1 f32
               + H_ALL * OUT_PAD * 2 + O_ALL * 4)       # W2 bf16 + b2 f32
    # double-buffering on every operand (conservative) + compiler slack
    return 2 * (x_tile + o_tile + weights) + (4 << 20)


def _fused_heads_kernel(x_ref, w1_ref, b1_ref, w2_ref, b2_ref, o_ref):
    # x_ref : (TB, F)     f32   w1_ref: (F, 1024)    bf16
    # b1_ref: (1, 1024)   f32   w2_ref: (1024, 128)  bf16 (head h in rows h*256:(h+1)*256)
    # b2_ref: (1, 512)    f32   o_ref : (TB, 512)    out_dtype
    x = x_ref[...].astype(jnp.bfloat16)                 # cast in-kernel (no wrapper pass)
    h = jnp.dot(x, w1_ref[...], preferred_element_type=jnp.float32)
    h = jnp.maximum(h + b1_ref[...], 0.0).astype(jnp.bfloat16)   # bias+ReLU in f32, then bf16
    ys = []
    for hd in range(NUM_HEADS):                         # 4 dense per-head dots (no zero FLOPs)
        ys.append(jnp.dot(h[:, hd * HIDDEN:(hd + 1) * HIDDEN],
                          w2_ref[hd * HIDDEN:(hd + 1) * HIDDEN, :],
                          preferred_element_type=jnp.float32))
    y = jnp.concatenate(ys, axis=-1) + b2_ref[...]      # single lane-dense (TB,512) slab
    o_ref[...] = y.astype(o_ref.dtype)


def init_params(key, channels):
    """nn.Linear-style U(-1/sqrt(fan_in), 1/sqrt(fan_in)) init, assembled into
    the fused layout the kernel consumes."""
    feat = channels * 9 * 4
    keys = jax.random.split(key, 4 * NUM_HEADS)
    bound1 = 1.0 / jnp.sqrt(jnp.float32(feat))
    bound2 = 1.0 / jnp.sqrt(jnp.float32(HIDDEN))

    w1_all = jnp.zeros((feat, H_ALL), jnp.float32)
    b1_all = jnp.zeros((H_ALL,), jnp.float32)
    w2_all = jnp.zeros((H_ALL, OUT_PAD), jnp.float32)   # per-head dense, lane-padded
    b2_all = jnp.zeros((O_ALL,), jnp.float32)

    for h, out_dim in enumerate(OUT_DIMS):
        k0, k1, k2, k3 = keys[4 * h: 4 * h + 4]
        w1 = jax.random.uniform(k0, (feat, HIDDEN), jnp.float32, -bound1, bound1)
        b1 = jax.random.uniform(k1, (HIDDEN,), jnp.float32, -bound1, bound1)
        w2 = jax.random.uniform(k2, (HIDDEN, out_dim), jnp.float32, -bound2, bound2)
        b2 = jax.random.uniform(k3, (out_dim,), jnp.float32, -bound2, bound2)
        w1_all = w1_all.at[:, h * HIDDEN:(h + 1) * HIDDEN].set(w1)
        b1_all = b1_all.at[h * HIDDEN:(h + 1) * HIDDEN].set(b1)
        w2_all = w2_all.at[h * HIDDEN:(h + 1) * HIDDEN, :out_dim].set(w2)
        b2_all = b2_all.at[h * OUT_PAD:h * OUT_PAD + out_dim].set(b2)

    return (w1_all.astype(jnp.bfloat16),          # (F, 1024)   bf16
            b1_all.reshape(1, H_ALL),             # (1, 1024)   f32
            w2_all.astype(jnp.bfloat16),          # (1024, 128) bf16
            b2_all.reshape(1, O_ALL))             # (1, 512)    f32


def policy_head_forward(x, params, out_dtype=jnp.float32):
    """x: (B, channels*9*4) f32 -> (p, aux1, aux2, aux3)."""
    w1, b1, w2, b2 = params
    B, F = x.shape
    out_itemsize = jnp.dtype(out_dtype).itemsize

    # ---- batch tiling: large tiles, minimal pad waste, >=2 steps for v7x ----
    TB_MAX = 1024
    num_tiles = max(1, _cdiv(B, TB_MAX))
    if B >= 32:
        num_tiles = max(num_tiles, 2)            # keep both v7x TensorCores busy
    TB = min(TB_MAX, _round_up(_cdiv(B, num_tiles), 16))

    vmem_cap = _vmem_capacity_bytes()
    while _vmem_estimate(TB, F, out_itemsize) > int(0.9 * vmem_cap) and TB > 16:
        TB = max(16, _round_up(TB // 2, 16))     # shrink if large F would blow VMEM

    num_tiles = _cdiv(B, TB)
    B_pad = num_tiles * TB
    if B_pad != B:
        # Pad only the ragged tail with zeros (keeps MXU inputs finite; padded
        # output rows are sliced off below).
        x = jnp.pad(x, ((0, B_pad - B), (0, 0)))

    flops = 2 * B_pad * F * H_ALL + 2 * B_pad * NUM_HEADS * HIDDEN * OUT_PAD
    bytes_accessed = (B_pad * F * 4                      # x (f32)
                      + F * H_ALL * 2 + H_ALL * 4        # W1 (bf16) + b1 (f32)
                      + H_ALL * OUT_PAD * 2 + O_ALL * 4  # W2 (bf16) + b2 (f32)
                      + B_pad * O_ALL * out_itemsize)    # out
    cost = pl.CostEstimate(flops=flops, transcendentals=0,
                           bytes_accessed=bytes_accessed)

    vmem_limit = int(min(vmem_cap,
                         max(_vmem_estimate(TB, F, out_itemsize), 16 << 20)))

    out = pl.pallas_call(
        _fused_heads_kernel,
        out_shape=jax.ShapeDtypeStruct((B_pad, O_ALL), out_dtype),
        grid_spec=pltpu.PrefetchScalarGridSpec(
            num_scalar_prefetch=0,
            grid=(num_tiles,),
            in_specs=[
                pl.BlockSpec((TB, F), lambda i: (i, 0)),          # x tile (f32)
                pl.BlockSpec((F, H_ALL), lambda i: (0, 0)),       # W1 (resident)
                pl.BlockSpec((1, H_ALL), lambda i: (0, 0)),       # b1
                pl.BlockSpec((H_ALL, OUT_PAD), lambda i: (0, 0)), # W2 per-head dense
                pl.BlockSpec((1, O_ALL), lambda i: (0, 0)),       # b2
            ],
            out_specs=pl.BlockSpec((TB, O_ALL), lambda i: (i, 0)),
        ),
        compiler_params=pltpu.CompilerParams(
            dimension_semantics=("parallel",),
            vmem_limit_bytes=vmem_limit),
        cost_estimate=cost,
    )(x, w1, b1, w2, b2)

    # Single batch-major (B, 512) slab -> contiguous per-head slices.
    p = out[:B, 0:OUT_DIMS[0]]
    p_aux1 = out[:B, OUT_PAD:OUT_PAD + OUT_DIMS[1]]
    p_aux2 = out[:B, 2 * OUT_PAD:2 * OUT_PAD + OUT_DIMS[2]]
    p_aux3 = out[:B, 3 * OUT_PAD:3 * OUT_PAD + OUT_DIMS[3]]
    return p, p_aux1, p_aux2, p_aux3


def _reference_forward(x, params):
    """Plain-JAX reference using the same bf16-rounded matmul operands."""
    w1, b1, w2, b2 = params
    xh = x.astype(jnp.bfloat16).astype(jnp.float32)
    h = jnp.maximum(xh @ w1.astype(jnp.float32) + b1, 0.0)
    hh = h.astype(jnp.bfloat16).astype(jnp.float32)
    w2f = w2.astype(jnp.float32)
    outs = []
    for hd, d in enumerate(OUT_DIMS):
        y = hh[:, hd * HIDDEN:(hd + 1) * HIDDEN] @ w2f[hd * HIDDEN:(hd + 1) * HIDDEN, :]
        y = y + b2[:, hd * OUT_PAD:(hd + 1) * OUT_PAD]
        outs.append(y[:, :d])
    return tuple(outs)


if __name__ == "__main__":
    channels = 4
    batch = 2
    feat = channels * 9 * 4  # 144

    key = jax.random.PRNGKey(0)
    kx, kp = jax.random.split(key)
    x = jax.random.normal(kx, (batch, feat), jnp.float32)
    params = init_params(kp, channels)

    outs = policy_head_forward(x, params)
    outs = jax.block_until_ready(outs)

    # sanity check against plain-JAX reference (same bf16 operand rounding)
    refs = _reference_forward(x, params)
    for o, r, d in zip(outs, refs, OUT_DIMS):
        assert o.shape == (batch, d), o.shape
        assert jnp.allclose(o, r, atol=2e-3, rtol=2e-3), float(jnp.max(jnp.abs(o - r)))

    print("KERNEL_OK")
</pallas_src>

<mosaic_0001>
module attributes {stable_mosaic.version = 11 : i64} {
  func.func @_fused_heads_kernel(%arg0: i32, %arg1: memref<16x144xf32, #tpu.memory_space<vmem>>, %arg2: memref<144x1024xbf16, #tpu.memory_space<vmem>>, %arg3: memref<1x1024xf32, #tpu.memory_space<vmem>>, %arg4: memref<1024x128xbf16, #tpu.memory_space<vmem>>, %arg5: memref<1x512xf32, #tpu.memory_space<vmem>>, %arg6: memref<16x512xf32, #tpu.memory_space<vmem>>) attributes {dimension_semantics = [#tpu.dimension_semantics<parallel>], iteration_bounds = array<i64: 1>, scalar_prefetch = 0 : i64, scratch_operands = 0 : i64, tpu.core_type = #tpu.core_type<tc>, window_params = [{transform_indices = @transform_0, window_bounds = array<i64: 16, 144>}, {pipeline_mode = #tpu.pipeline_mode<synchronous>, transform_indices = @transform_1, window_bounds = array<i64: 144, 1024>}, {pipeline_mode = #tpu.pipeline_mode<synchronous>, transform_indices = @transform_2, window_bounds = array<i64: 1, 1024>}, {pipeline_mode = #tpu.pipeline_mode<synchronous>, transform_indices = @transform_3, window_bounds = array<i64: 1024, 128>}, {pipeline_mode = #tpu.pipeline_mode<synchronous>, transform_indices = @transform_4, window_bounds = array<i64: 1, 512>}, {transform_indices = @transform_5, window_bounds = array<i64: 16, 512>}]} {
    %c0 = arith.constant 0 : index
    %c0_0 = arith.constant 0 : index
    %0 = vector.load %arg1[%c0, %c0_0] : memref<16x144xf32, #tpu.memory_space<vmem>>, vector<16x144xf32>
    %1 = arith.truncf %0 : vector<16x144xf32> to vector<16x144xbf16>
    %c0_1 = arith.constant 0 : index
    %c0_2 = arith.constant 0 : index
    %2 = vector.load %arg2[%c0_1, %c0_2] : memref<144x1024xbf16, #tpu.memory_space<vmem>>, vector<144x1024xbf16>
    %cst = arith.constant dense<0.000000e+00> : vector<16x1024xf32>
    %3 = tpu.matmul %1, %2, %cst {dimension_numbers = #tpu.dot_dimension_numbers<[1], [0], [0], [1], [0, 0, 1, 1], [], []>} : vector<16x144xbf16>, vector<144x1024xbf16>, vector<16x1024xf32> -> vector<16x1024xf32>
    %c0_3 = arith.constant 0 : index
    %c0_4 = arith.constant 0 : index
    %4 = vector.load %arg3[%c0_3, %c0_4] : memref<1x1024xf32, #tpu.memory_space<vmem>>, vector<1x1024xf32>
    %5 = vector.broadcast %4 : vector<1x1024xf32> to vector<16x1024xf32>
    %6 = arith.addf %3, %5 : vector<16x1024xf32>
    %cst_5 = arith.constant 0.000000e+00 : f32
    %7 = vector.broadcast %cst_5 : f32 to vector<16x1024xf32>
    %8 = arith.maximumf %6, %7 : vector<16x1024xf32>
    %9 = arith.truncf %8 : vector<16x1024xf32> to vector<16x1024xbf16>
    %10 = vector.extract_strided_slice %9 {offsets = [0, 0], sizes = [16, 256], strides = [1, 1]} : vector<16x1024xbf16> to vector<16x256xbf16>
    %c0_6 = arith.constant 0 : index
    %c0_7 = arith.constant 0 : index
    %11 = vector.load %arg4[%c0_6, %c0_7] : memref<1024x128xbf16, #tpu.memory_space<vmem>>, vector<256x128xbf16>
    %cst_8 = arith.constant dense<0.000000e+00> : vector<16x128xf32>
    %12 = tpu.matmul %10, %11, %cst_8 {dimension_numbers = #tpu.dot_dimension_numbers<[1], [0], [0], [1], [0, 0, 1, 1], [], []>} : vector<16x256xbf16>, vector<256x128xbf16>, vector<16x128xf32> -> vector<16x128xf32>
    %13 = vector.extract_strided_slice %9 {offsets = [0, 256], sizes = [16, 256], strides = [1, 1]} : vector<16x1024xbf16> to vector<16x256xbf16>
    %c256 = arith.constant 256 : index
    %c0_9 = arith.constant 0 : index
    %14 = vector.load %arg4[%c256, %c0_9] : memref<1024x128xbf16, #tpu.memory_space<vmem>>, vector<256x128xbf16>
    %cst_10 = arith.constant dense<0.000000e+00> : vector<16x128xf32>
    %15 = tpu.matmul %13, %14, %cst_10 {dimension_numbers = #tpu.dot_dimension_numbers<[1], [0], [0], [1], [0, 0, 1, 1], [], []>} : vector<16x256xbf16>, vector<256x128xbf16>, vector<16x128xf32> -> vector<16x128xf32>
    %16 = vector.extract_strided_slice %9 {offsets = [0, 512], sizes = [16, 256], strides = [1, 1]} : vector<16x1024xbf16> to vector<16x256xbf16>
    %c512 = arith.constant 512 : index
    %c0_11 = arith.constant 0 : index
    %17 = vector.load %arg4[%c512, %c0_11] : memref<1024x128xbf16, #tpu.memory_space<vmem>>, vector<256x128xbf16>
    %cst_12 = arith.constant dense<0.000000e+00> : vector<16x128xf32>
    %18 = tpu.matmul %16, %17, %cst_12 {dimension_numbers = #tpu.dot_dimension_numbers<[1], [0], [0], [1], [0, 0, 1, 1], [], []>} : vector<16x256xbf16>, vector<256x128xbf16>, vector<16x128xf32> -> vector<16x128xf32>
    %19 = vector.extract_strided_slice %9 {offsets = [0, 768], sizes = [16, 256], strides = [1, 1]} : vector<16x1024xbf16> to vector<16x256xbf16>
    %c768 = arith.constant 768 : index
    %c0_13 = arith.constant 0 : index
    %20 = vector.load %arg4[%c768, %c0_13] : memref<1024x128xbf16, #tpu.memory_space<vmem>>, vector<256x128xbf16>
    %cst_14 = arith.constant dense<0.000000e+00> : vector<16x128xf32>
    %21 = tpu.matmul %19, %20, %cst_14 {dimension_numbers = #tpu.dot_dimension_numbers<[1], [0], [0], [1], [0, 0, 1, 1], [], []>} : vector<16x256xbf16>, vector<256x128xbf16>, vector<16x128xf32> -> vector<16x128xf32>
    %22 = tpu.concatenate %12, %15, %18, %21 in 1 : vector<16x128xf32>, vector<16x128xf32>, vector<16x128xf32>, vector<16x128xf32> -> vector<16x512xf32>
    %c0_15 = arith.constant 0 : index
    %c0_16 = arith.constant 0 : index
    %23 = vector.load %arg5[%c0_15, %c0_16] : memref<1x512xf32, #tpu.memory_space<vmem>>, vector<1x512xf32>
    %24 = vector.broadcast %23 : vector<1x512xf32> to vector<16x512xf32>
    %25 = arith.addf %22, %24 : vector<16x512xf32>
    %c0_17 = arith.constant 0 : index
    %c0_18 = arith.constant 0 : index
    %26 = vector.load %arg6[%c0_17, %c0_18] : memref<16x512xf32, #tpu.memory_space<vmem>>, vector<16x512xf32>
    tpu.vector_store %arg6[%c0_17, %c0_18], %25 {strides = array<i32>} : memref<16x512xf32, #tpu.memory_space<vmem>>, vector<16x512xf32>,
    return
  }
  func.func @transform_0(%arg0: i32) -> (i32, i32) {
    %c0_i32 = arith.constant 0 : i32
    %c0_i32_0 = arith.constant 0 : i32
    return %arg0, %c0_i32 : i32, i32
  }
  func.func @transform_1(%arg0: i32) -> (i32, i32) {
    %c0_i32 = arith.constant 0 : i32
    %c0_i32_0 = arith.constant 0 : i32
    %c0_i32_1 = arith.constant 0 : i32
    return %c0_i32, %c0_i32_0 : i32, i32
  }
  func.func @transform_2(%arg0: i32) -> (i32, i32) {
    %c0_i32 = arith.constant 0 : i32
    %c0_i32_0 = arith.constant 0 : i32
    %c0_i32_1 = arith.constant 0 : i32
    return %c0_i32, %c0_i32_0 : i32, i32
  }
  func.func @transform_3(%arg0: i32) -> (i32, i32) {
    %c0_i32 = arith.constant 0 : i32
    %c0_i32_0 = arith.constant 0 : i32
    %c0_i32_1 = arith.constant 0 : i32
    return %c0_i32, %c0_i32_0 : i32, i32
  }
  func.func @transform_4(%arg0: i32) -> (i32, i32) {
    %c0_i32 = arith.constant 0 : i32
    %c0_i32_0 = arith.constant 0 : i32
    %c0_i32_1 = arith.constant 0 : i32
    return %c0_i32, %c0_i32_0 : i32, i32
  }
  func.func @transform_5(%arg0: i32) -> (i32, i32) {
    %c0_i32 = arith.constant 0 : i32
    %c0_i32_0 = arith.constant 0 : i32
    return %arg0, %c0_i32 : i32, i32
  }
}

</mosaic_0001>

<bundles_post_ra>
// kernel: tpu_custom_call.1
= control target key start
LH: loop header
LB: loop body
LE: loop exit
PB: predicated region body
PF: predicated region fallthrough
CT: control target
= control target key end

     0   :  { %10 = vsyncpa [#allocation3], 0  ;;  %s2078_s0 = inlined_call_operand.hbm [shape: f32[16,144], index: 0, kind: input, shape index: {}]   ;;  %s2079_s1 = inlined_call_operand.hbm [shape: bf16[144,1024], index: 1, kind: input, shape index: {}]   ;;  %s2080_s2 = inlined_call_operand.hbm [shape: f32[1,1024], index: 2, kind: input, shape index: {}]   ;;  %s2081_s3 = inlined_call_operand.hbm [shape: bf16[1024,128], index: 3, kind: input, shape index: {}]   ;;  %s2082_s4 = inlined_call_operand.vmem [shape: f32[1,512], index: 4, kind: input, shape index: {}]   ;;  %s2083_s5 = inlined_call_operand.hbm [shape: f32[16,512], index: 5, kind: output, shape index: {}]  }
   0x1   :  { %11 = vsyncpa [#allocation6], 0 }
   0x2   :  { %12 = vsyncpa [#allocation9], 0 }
   0x3   :  { %13 = vsyncpa [#allocation4], 0  ;;  %s1909_s18 = smov [#allocation5]   ;;  %s1791_s22 = scalar_lea.hbm %s2079_s1, 9216 }
   0x4   :  { %s31_s19 = sshll.u32 %s1909_s18, 4  ;;  %p1792_p0 = scmp.ne.s32.totalorder %s2079_s1, %s1791_s22  ;;  %s32_s19 = int_to_ptr.vmem [resolvable:$true] %s31_s19 }
   0x5   :  { %p1795_p1 = scmp.lt.u32.totalorder %s1791_s22, %s2079_s1 }
   0x7   :  { %p1797_p2 = pnand %p1795_p1, %p1792_p0 }
   0x9   :  { %1800 = shalt.err (!%p1797_p2)
}
   0xa   :  { %s1801_s27 = scalar_lea.vmem %s32_s19, 9216  ;;  %p1806_p4 = scmp.lt.s32.totalorder %s32_s19, %s32_s19 }
   0xb   :  { %p1802_p3 = scmp.ne.s32.totalorder %s32_s19, %s1801_s27  ;;  %p1807_p5 = scmp.lt.s32.totalorder %s1801_s27, %s1801_s27 }
   0xd   :  { %p1808_p6 = por %p1807_p5, %p1806_p4 }
   0xf   :  { %p1809_p7 = pnand %p1808_p6, %p1802_p3 }
  0x11   :  { %1812 = shalt.err (!%p1809_p7)
}
  0x12   :  { %s1910_s28 = smov 512   ;;  %s1911_s29 = smov 32  }
  0x13   :  { %37 = dma.hbm_to_vmem [thread:$0]  %s2079_s1, 9216, %s32_s19, [#allocation6], %s1910_s28, %s1910_s28, %s1911_s29  }
  0x14   :  { %s1912_s7 = smov [#allocation2]   ;;  %s1813_s11 = scalar_lea.hbm %s2078_s0, 512 }
  0x15   :  { %s19_s8 = sshll.u32 %s1912_s7, 4  ;;  %p1814_p8 = scmp.ne.s32.totalorder %s2078_s0, %s1813_s11  ;;  %s20_s8 = int_to_ptr.vmem [resolvable:$true] %s19_s8 }
  0x16   :  { %p1817_p9 = scmp.lt.u32.totalorder %s1813_s11, %s2078_s0 }
  0x18   :  { %p1819_p10 = pnand %p1817_p9, %p1814_p8 }
  0x1a   :  { %1822 = shalt.err (!%p1819_p10)
}
  0x1b   :  { %s1823_s16 = scalar_lea.vmem %s20_s8, 512  ;;  %p1828_p12 = scmp.lt.s32.totalorder %s20_s8, %s20_s8 }
  0x1c   :  { %p1824_p11 = scmp.ne.s32.totalorder %s20_s8, %s1823_s16  ;;  %p1829_p13 = scmp.lt.s32.totalorder %s1823_s16, %s1823_s16 }
  0x1e   :  { %p1830_p0 = por %p1829_p13, %p1828_p12 }
  0x20   :  { %p1831_p1 = pnand %p1830_p0, %p1824_p11 }
  0x22   :  { %1834 = shalt.err (!%p1831_p1)
}
  0x23   :  { %s1913_s1 = smov 256   ;;  %s1914_s17 = smov 16  }
  0x24   :  { %25 = dma.hbm_to_vmem [thread:$0]  %s2078_s0, 512, %s20_s8, [#allocation3], %s1913_s1, %s1913_s1, %s1914_s17  }
  0x25   :  { %s1915_s20 = smov [#allocation7]   ;;  %s1916_s22 = smov [#allocation8]  }
  0x26   :  { %s44_s21 = sshll.u32 %s1915_s20, 4  ;;  %s53_s23 = sshll.u32 %s1916_s22, 4  ;;  %s45_s21 = int_to_ptr.vmem [resolvable:$true] %s44_s21  ;;  %s1977_s23 = int_to_ptr.vmem [resolvable:$true] %s53_s23 }
  0x27   :  { %s1835_s26 = scalar_lea.hbm %s2080_s2, 128 }
  0x28   :  { %p1836_p2 = scmp.ne.s32.totalorder %s2080_s2, %s1835_s26  ;;  %p1839_p3 = scmp.lt.u32.totalorder %s1835_s26, %s2080_s2 }
  0x2a   :  { %p1841_p4 = pnand %p1839_p3, %p1836_p2 }
  0x2c   :  { %1844 = shalt.err (!%p1841_p4)
}
  0x2d   :  { %s1845_s0 = scalar_lea.vmem %s45_s21, 128  ;;  %p1850_p6 = scmp.lt.s32.totalorder %s45_s21, %s45_s21 }
  0x2e   :  { %p1846_p5 = scmp.ne.s32.totalorder %s45_s21, %s1845_s0  ;;  %p1851_p7 = scmp.lt.s32.totalorder %s1845_s0, %s1845_s0 }
  0x30   :  { %p1852_p8 = por %p1851_p7, %p1850_p6 }
  0x32   :  { %p1853_p9 = pnand %p1852_p8, %p1846_p5 }
  0x34   :  { %1856 = shalt.err (!%p1853_p9)
}
  0x35   :  { %47 = dma.hbm_to_vmem [thread:$0]  %s2080_s2, 128, %s45_s21, [#allocation6]  }
  0x36   :  { %s1857_s12 = scalar_lea.hbm %s2081_s3, 8192 }
  0x37   :  { %p1858_p10 = scmp.ne.s32.totalorder %s2081_s3, %s1857_s12  ;;  %p1861_p11 = scmp.lt.u32.totalorder %s1857_s12, %s2081_s3 }
  0x39   :  { %p1863_p12 = pnand %p1861_p11, %p1858_p10 }
  0x3b   :  { %1866 = shalt.err (!%p1863_p12)
}
  0x3c   :  { %s1867_s1 = scalar_lea.vmem %s1977_s23, 8192  ;;  %p1872_p0 = scmp.lt.s32.totalorder %s1977_s23, %s1977_s23 }
  0x3d   :  { %p1868_p13 = scmp.ne.s32.totalorder %s1977_s23, %s1867_s1  ;;  %p1873_p1 = scmp.lt.s32.totalorder %s1867_s1, %s1867_s1 }
  0x3f   :  { %p1874_p2 = por %p1873_p1, %p1872_p0 }
  0x41   :  { %p1875_p3 = pnand %p1874_p2, %p1868_p13 }
  0x43   :  { %1878 = shalt.err (!%p1875_p3)
}
  0x44   :  { %s1917_s2 = smov 64   ;;  %s1918_s17 = smov 4  }
  0x45   :  { %59 = dma.hbm_to_vmem [thread:$0]  %s2081_s3, 8192, %s1977_s23, [#allocation9], %s1917_s2, %s1917_s2, %s1918_s17  }
  0x46   :  { %1901 = dma.done.wait [#allocation3], 512  }
  0x47   :  { %1902 = vsyncadd [#allocation3], 4294966784 }
  0x48   :  { %1903 = dma.done.wait [#allocation6], 9344  }
  0x49   :  { %1904 = vsyncadd [#allocation6], 4294957952 }
  0x4a   :  { %1905 = dma.done.wait [#allocation9], 8192  }
  0x4b   :  { %1906 = vsyncadd [#allocation9], 4294959104  ;;  %v81_v0 = vld [vmem:[#allocation5] sm:$0xff]  ;;  %v82_v2 = vld [vmem:[#allocation5 + $0x8] sm:$0xff]  ;;  %vm555_vm0 = vcmask 130048  }
  0x4c   :  { %v85_v1 = vld [vmem:[#allocation5 + $0x20] sm:$0xff]  ;;  %v86_v4 = vld [vmem:[#allocation5 + $0x28] sm:$0xff]  ;;  %v78_v36 = vld [vmem:[#allocation2 + $0x18] sm:$0xff] }
  0x4d   :  { %v1489_v3 = vcombine.high %v81_v0, %v85_v1  ;;  %v1488_v5 = vcombine.low %v81_v0, %v85_v1  ;;  %v89_v6 = vld [vmem:[#allocation5 + $0x40] sm:$0xff]  ;;  %v1491_v8 = vcombine.high %v82_v2, %v86_v4  ;;  %v1490_v9 = vcombine.low %v82_v2, %v86_v4  ;;  %v90_v11 = vld [vmem:[#allocation5 + $0x48] sm:$0xff] }
  0x4e   :  { %v93_v7 = vld [vmem:[#allocation5 + $0x60] sm:$0xff]  ;;  %v94_v12 = vld [vmem:[#allocation5 + $0x68] sm:$0xff] }
  0x4f   :  { %v1497_v10 = vcombine.high %v89_v6, %v93_v7  ;;  %v97_v13 = vld [vmem:[#allocation5 + $0x80] sm:$0xff]  ;;  %559 = vmatprep.subr.bf16.mxu0 %v1489_v3  ;;  %v1499_v14 = vcombine.high %v90_v11, %v94_v12  ;;  %v98_v16 = vld [vmem:[#allocation5 + $0x88] sm:$0xff]  ;;  %602 = vmatprep.subr.bf16.mxu1 %v1491_v8  ;;  %v1496_v18 = vcombine.low %v89_v6, %v93_v7  ;;  %v83_v6 = vld [vmem:[#allocation5 + $0x10] sm:$0xff] }
  0x50   :  { %v101_v15 = vld [vmem:[#allocation5 + $0xa0] sm:$0xff]  ;;  %v102_v17 = vld [vmem:[#allocation5 + $0xa8] sm:$0xff]  ;;  %560 = vmatpush1.bf16.msra.mxu0 %v1488_v5  ;;  %603 = vmatpush1.bf16.msra.mxu1 %v1490_v9  ;;  %v1498_v19 = vcombine.low %v90_v11, %v94_v12  ;;  %v87_v9 = vld [vmem:[#allocation5 + $0x30] sm:$0xff] }
  0x51   :  { %561 = vmatprep.subr.bf16.mxu0 %v1497_v10  ;;  %v1505_v20 = vcombine.high %v97_v13, %v101_v15  ;;  %604 = vmatprep.subr.bf16.mxu1 %v1499_v14  ;;  %v1507_v21 = vcombine.high %v98_v16, %v102_v17  ;;  %v105_v22 = vld [vmem:[#allocation5 + $0xc0] sm:$0xff]  ;;  %v106_v24 = vld [vmem:[#allocation5 + $0xc8] sm:$0xff]  ;;  %v1504_v26 = vcombine.low %v97_v13, %v101_v15  ;;  %v77_v12 = vld [vmem:[#allocation2 + $0x10] sm:$0xff] }
  0x52   :  { %v109_v23 = vld [vmem:[#allocation5 + $0xe0] sm:$0xff]  ;;  %v110_v25 = vld [vmem:[#allocation5 + $0xe8] sm:$0xff]  ;;  %v1506_v27 = vcombine.low %v98_v16, %v102_v17  ;;  %v84_v13 = vld [vmem:[#allocation5 + $0x18] sm:$0xff] }
  0x53   :  { %v1513_v28 = vcombine.high %v105_v22, %v109_v23  ;;  %v1515_v29 = vcombine.high %v106_v24, %v110_v25  ;;  %v113_v30 = vld [vmem:[#allocation5 + $0x100] sm:$0xff]  ;;  %v114_v32 = vld [vmem:[#allocation5 + $0x108] sm:$0xff]  ;;  %v1512_v34 = vcombine.low %v105_v22, %v109_v23  ;;  %v1514_v37 = vcombine.low %v106_v24, %v110_v25  ;;  %v88_v14 = vld [vmem:[#allocation5 + $0x38] sm:$0xff] }
  0x54   :  { %562 = vmatpush1.bf16.msra.mxu0 %v1496_v18  ;;  %605 = vmatpush1.bf16.msra.mxu1 %v1498_v19  ;;  %v117_v31 = vld [vmem:[#allocation5 + $0x120] sm:$0xff]  ;;  %v118_v33 = vld [vmem:[#allocation5 + $0x128] sm:$0xff]  ;;  %v91_v16 = vld [vmem:[#allocation5 + $0x50] sm:$0xff]  ;;  %v1493_v18 = vcombine.high %v83_v6, %v87_v9  ;;  %v1492_v24 = vcombine.low %v83_v6, %v87_v9 }
  0x55   :  { %563 = vmatprep.subr.bf16.mxu0 %v1505_v20  ;;  %606 = vmatprep.subr.bf16.mxu1 %v1507_v21  ;;  %v76_v35 = vld [vmem:[#allocation2 + $0x8] sm:$0xff]  ;;  %v1521_v38 = vcombine.high %v113_v30, %v117_v31  ;;  %v1523_v40 = vcombine.high %v114_v32, %v118_v33  ;;  %v121_v41 = vld [vmem:[#allocation5 + $0x140] sm:$0xff]  ;;  %v1520_v45 = vcombine.low %v113_v30, %v117_v31  ;;  %v95_v19 = vld [vmem:[#allocation5 + $0x70] sm:$0xff] }
  0x56   :  { %v2008_v39 = vpack.c.bf16 %v78_v36, %v76_v35  ;;  %v125_v42 = vld [vmem:[#allocation5 + $0x160] sm:$0xff]  ;;  %v122_v43 = vld [vmem:[#allocation5 + $0x148] sm:$0xff]  ;;  %v1522_v46 = vcombine.low %v114_v32, %v118_v33  ;;  %v1495_v20 = vcombine.high %v84_v13, %v88_v14  ;;  %v92_v21 = vld [vmem:[#allocation5 + $0x58] sm:$0xff]  ;;  %v1500_v32 = vcombine.low %v91_v16, %v95_v19 }
  0x57   :  { %v126_v44 = vld [vmem:[#allocation5 + $0x168] sm:$0xff]  ;;  %v1529_v47 = vcombine.high %v121_v41, %v125_v42  ;;  %v129_v49 = vld [vmem:[#allocation5 + $0x180] sm:$0xff]  ;;  %v1528_v53 = vcombine.low %v121_v41, %v125_v42  ;;  %v96_v23 = vld [vmem:[#allocation5 + $0x78] sm:$0xff] }
  0x58   :  { %564 = vmatpush1.bf16.msra.mxu0 %v1504_v26  ;;  %607 = vmatpush1.bf16.msra.mxu1 %v1506_v27  ;;  %v1531_v48 = vcombine.high %v122_v43, %v126_v44  ;;  %v133_v50 = vld [vmem:[#allocation5 + $0x1a0] sm:$0xff]  ;;  %v130_v51 = vld [vmem:[#allocation5 + $0x188] sm:$0xff]  ;;  %v1530_v54 = vcombine.low %v122_v43, %v126_v44  ;;  %v99_v25 = vld [vmem:[#allocation5 + $0x90] sm:$0xff]  ;;  %v1494_v26 = vcombine.low %v84_v13, %v88_v14 }
  0x59   :  { %565 = vmatprep.subr.bf16.mxu0 %v1513_v28  ;;  %608 = vmatprep.subr.bf16.mxu1 %v1515_v29  ;;  %v134_v52 = vld [vmem:[#allocation5 + $0x1a8] sm:$0xff]  ;;  %v1537_v55 = vcombine.high %v129_v49, %v133_v50  ;;  %v137_v57 = vld [vmem:[#allocation5 + $0x1c0] sm:$0xff]  ;;  %v1536_v61 = vcombine.low %v129_v49, %v133_v50  ;;  %v1501_v27 = vcombine.high %v91_v16, %v95_v19  ;;  %v103_v28 = vld [vmem:[#allocation5 + $0xb0] sm:$0xff] }
  0x5a   :  { %1560 = vmatprep.mubr.msk.bf16.mxu0 %vm555_vm0, %v2008_v39  ;;  %1561 = vmatprep.mubr.msk.bf16.mxu1 %vm555_vm0, %v2008_v39  ;;  %v1539_v56 = vcombine.high %v130_v51, %v134_v52  ;;  %v141_v58 = vld [vmem:[#allocation5 + $0x1e0] sm:$0xff]  ;;  %v138_v59 = vld [vmem:[#allocation5 + $0x1c8] sm:$0xff]  ;;  %v1538_v63 = vcombine.low %v130_v51, %v134_v52  ;;  %v1503_v29 = vcombine.high %v92_v21, %v96_v23  ;;  %v100_v30 = vld [vmem:[#allocation5 + $0x98] sm:$0xff] }
  0x5b   :  { %v142_v60 = vld [vmem:[#allocation5 + $0x1e8] sm:$0xff]  ;;  %v145_v62 = vld [vmem:[#allocation5 + $0x200] sm:$0xff]  ;;  %v1545_v0 = vcombine.high %v137_v57, %v141_v58  ;;  %v1544_v5 = vcombine.low %v137_v57, %v141_v58  ;;  %v104_v31 = vld [vmem:[#allocation5 + $0xb8] sm:$0xff]  ;;  %v1509_v35 = vcombine.high %v99_v25, %v103_v28  ;;  %v1508_v41 = vcombine.low %v99_v25, %v103_v28 }
  0x5c   :  { %566 = vmatpush1.bf16.msra.mxu0 %v1512_v34  ;;  %609 = vmatpush1.bf16.msra.mxu1 %v1514_v37  ;;  %v149_v1 = vld [vmem:[#allocation5 + $0x220] sm:$0xff]  ;;  %v1547_v2 = vcombine.high %v138_v59, %v142_v60  ;;  %v146_v3 = vld [vmem:[#allocation5 + $0x208] sm:$0xff]  ;;  %v1546_v7 = vcombine.low %v138_v59, %v142_v60  ;;  %v107_v33 = vld [vmem:[#allocation5 + $0xd0] sm:$0xff]  ;;  %v1502_v34 = vcombine.low %v92_v21, %v96_v23 }
  0x5d   :  { %567 = vmatprep.subr.bf16.mxu0 %v1521_v38  ;;  %610 = vmatprep.subr.bf16.mxu1 %v1523_v40  ;;  %v150_v4 = vld [vmem:[#allocation5 + $0x228] sm:$0xff]  ;;  %v1553_v8 = vcombine.high %v145_v62, %v149_v1  ;;  %v75_v11 = vld [vmem:[#allocation2] sm:$0xff]  ;;  %v1552_v15 = vcombine.low %v145_v62, %v149_v1  ;;  %v111_v36 = vld [vmem:[#allocation5 + $0xf0] sm:$0xff]  ;;  %v1511_v37 = vcombine.high %v100_v30, %v104_v31 }
  0x5e   :  { %v1555_v10 = vcombine.high %v146_v3, %v150_v4  ;;  %v1554_v17 = vcombine.low %v146_v3, %v150_v4  ;;  %v2014_v22 = vpack.c.bf16 %v77_v12, %v75_v11  ;;  %v108_v38 = vld [vmem:[#allocation5 + $0xd8] sm:$0xff]  ;;  %v1510_v42 = vcombine.low %v100_v30, %v104_v31  ;;  %v115_v44 = vld [vmem:[#allocation5 + $0x110] sm:$0xff]  ;;  %v1728_v23 = vld [vmem:[#allocation8 + $0xc0] sm:$0xff]  }
  0x5f   :  { %v112_v40 = vld [vmem:[#allocation5 + $0xf8] sm:$0xff]  ;;  %v1517_v43 = vcombine.high %v107_v33, %v111_v36  ;;  %v1516_v49 = vcombine.low %v107_v33, %v111_v36  ;;  %v123_v50 = vld [vmem:[#allocation5 + $0x150] sm:$0xff]  ;;  %v1729_v25 = vld [vmem:[#allocation8] sm:$0xff]  }
  0x60   :  { %568 = vmatpush1.bf16.msra.mxu0 %v1520_v45  ;;  %611 = vmatpush1.bf16.msra.mxu1 %v1522_v46  ;;  %v1519_v45 = vcombine.high %v108_v38, %v112_v40  ;;  %v119_v46 = vld [vmem:[#allocation5 + $0x130] sm:$0xff]  ;;  %v1518_v52 = vcombine.low %v108_v38, %v112_v40  ;;  %v136_v62 = vld [vmem:[#allocation5 + $0x1b8] sm:$0xff]  ;;  %v1740_v36 = vld [vmem:[#allocation8 + $0xd8] sm:$0xff]  }
  0x61   :  { %569 = vmatprep.subr.bf16.mxu0 %v1529_v47  ;;  %612 = vmatprep.subr.bf16.mxu1 %v1531_v48  ;;  %v116_v47 = vld [vmem:[#allocation5 + $0x118] sm:$0xff]  ;;  %v127_v51 = vld [vmem:[#allocation5 + $0x170] sm:$0xff]  ;;  %v1743_v38 = vld [vmem:[#allocation8 + $0x60] sm:$0xff]  }
  0x62   :  { %v120_v48 = vld [vmem:[#allocation5 + $0x138] sm:$0xff]  ;;  %v131_v57 = vld [vmem:[#allocation5 + $0x190] sm:$0xff]  ;;  %v1533_v60 = vcombine.high %v123_v50, %v127_v51  ;;  %v1744_v40 = vld [vmem:[#allocation8 + $0xe0] sm:$0xff]  }
  0x63   :  { %v135_v58 = vld [vmem:[#allocation5 + $0x1b0] sm:$0xff]  ;;  %v1526_v59 = vcombine.low %v116_v47, %v120_v48  ;;  %v144_v6 = vld [vmem:[#allocation5 + $0x1f8] sm:$0xff] }
  0x64   :  { %570 = vmatpush1.bf16.msra.mxu0 %v1528_v53  ;;  %613 = vmatpush1.bf16.msra.mxu1 %v1530_v54  ;;  %v124_v53 = vld [vmem:[#allocation5 + $0x158] sm:$0xff]  ;;  %v139_v1 = vld [vmem:[#allocation5 + $0x1d0] sm:$0xff]  ;;  %v1541_v4 = vcombine.high %v131_v57, %v135_v58 }
  0x65   :  { %571 = vmatprep.subr.bf16.mxu0 %v1537_v55  ;;  %614 = vmatprep.subr.bf16.mxu1 %v1539_v56  ;;  %v128_v54 = vld [vmem:[#allocation5 + $0x178] sm:$0xff]  ;;  %v1527_v55 = vcombine.high %v116_v47, %v120_v48  ;;  %v1524_v56 = vcombine.low %v115_v44, %v119_v46  ;;  %v147_v9 = vld [vmem:[#allocation5 + $0x210] sm:$0xff] }
  0x66   :  { %v1534_v3 = vcombine.low %v124_v53, %v128_v54  ;;  %v148_v13 = vld [vmem:[#allocation5 + $0x218] sm:$0xff]  ;;  %v1732_v28 = vld [vmem:[#allocation8 + $0xc8] sm:$0xff]  }
  0x67   :  { %v152_v14 = vld [vmem:[#allocation5 + $0x238] sm:$0xff]  ;;  %v1734_v30 = vld [vmem:[#allocation8 + $0x88] sm:$0xff]  }
  0x68   :  { %572 = vmatpush1.bf16.msra.mxu0 %v1536_v61  ;;  %615 = vmatpush1.bf16.msra.mxu1 %v1538_v63  ;;  %v132_v61 = vld [vmem:[#allocation5 + $0x198] sm:$0xff]  ;;  %v1535_v63 = vcombine.high %v124_v53, %v128_v54  ;;  %v1559_v19 = vcombine.high %v148_v13, %v152_v14  ;;  %v1758_v53 = vld [vmem:[#allocation8 + $0xb8] sm:$0xff]   ;;  %v1759_v54 = vld [vmem:[#allocation8 + $0x140] sm:$0xff]  }
  0x69   :  { %573 = vmatprep.subr.bf16.mxu0 %v1545_v0  ;;  %616 = vmatprep.subr.bf16.mxu1 %v1547_v2  ;;  %v1532_v0 = vcombine.low %v123_v50, %v127_v51  ;;  %v143_v2 = vld [vmem:[#allocation5 + $0x1f0] sm:$0xff]  ;;  %v1542_v11 = vcombine.low %v132_v61, %v136_v62  ;;  %v1735_v31 = vld [vmem:[#allocation8 + $0x50] sm:$0xff]   ;;  %v1755_v51 = vld [vmem:[#allocation8 + $0x78] sm:$0xff]  }
  0x6a   :  { %v1549_v12 = vcombine.high %v139_v1, %v143_v2  ;;  %v1548_v16 = vcombine.low %v139_v1, %v143_v2  ;;  %v1737_v33 = vld [vmem:[#allocation8 + $0x10] sm:$0xff]  }
  0x6b   :  { %v1751_v47 = vld [vmem:[#allocation8 + $0x70] sm:$0xff]  }
  0x6c   :  { %574 = vmatpush1.bf16.msra.mxu0 %v1544_v5  ;;  %617 = vmatpush1.bf16.msra.mxu1 %v1546_v7  ;;  %v140_v5 = vld [vmem:[#allocation5 + $0x1d8] sm:$0xff]  ;;  %v1543_v7 = vcombine.high %v132_v61, %v136_v62 }
  0x6d   :  { %575 = vmatprep.subr.bf16.mxu0 %v1553_v8  ;;  %618 = vmatprep.subr.bf16.mxu1 %v1555_v10  ;;  %v1540_v8 = vcombine.low %v131_v57, %v135_v58  ;;  %v151_v10 = vld [vmem:[#allocation5 + $0x230] sm:$0xff]  ;;  %v1752_v48 = vld [vmem:[#allocation8 + $0xf0] sm:$0xff]  }
  0x6e   :  { %v1556_v21 = vcombine.low %v147_v9, %v151_v10  ;;  %v1754_v50 = vld [vmem:[#allocation8 + $0xb0] sm:$0xff]  }
  0x70   :  { %576 = vmatpush1.bf16.msra.mxu0 %v1552_v15  ;;  %619 = vmatpush1.bf16.msra.mxu1 %v1554_v17  ;;  %v1551_v15 = vcombine.high %v140_v5, %v144_v6  ;;  %v1550_v17 = vcombine.low %v140_v5, %v144_v6 }
  0x71   :  { %645 = vmatprep.subr.bf16.mxu0 %v1493_v18  ;;  %688 = vmatprep.subr.bf16.mxu1 %v1495_v20  ;;  %v1557_v18 = vcombine.high %v147_v9, %v151_v10  ;;  %v1727_v20 = vld [vmem:[#allocation8 + $0x40] sm:$0xff]  }
  0x73   :  { %592 = vmatmul.mubr.bf16.vlgmr.msra.gmra.mrb[0].mxu0 %v2014_v22  ;;  %635 = vmatmul.mubr.bf16.vlgmr.msra.gmra.mrb[0].mxu1 %v2014_v22 }
  0x74   :  { %646 = vmatpush1.bf16.msra.mxu0 %v1492_v24  ;;  %689 = vmatpush1.bf16.msra.mxu1 %v1494_v26  ;;  %v1558_v24 = vcombine.low %v148_v13, %v152_v14  ;;  %v1730_v26 = vld [vmem:[#allocation8 + $0x80] sm:$0xff]  }
  0x75   :  { %647 = vmatprep.subr.bf16.mxu0 %v1501_v27  ;;  %690 = vmatprep.subr.bf16.mxu1 %v1503_v29  ;;  %v1731_v27 = vld [vmem:[#allocation8 + $0x48] sm:$0xff]  }
  0x76   :  { %1562 = vmatprep.mubr.msk.bf16.mxu0 %vm555_vm0, %v2008_v39  ;;  %1563 = vmatprep.mubr.msk.bf16.mxu1 %vm555_vm0, %v2008_v39  ;;  %v1525_v39 = vcombine.high %v115_v44, %v119_v46  ;;  %v1733_v29 = vld [vmem:[#allocation8 + $0x8] sm:$0xff]  }
  0x77   :  { %v1748_v44 = vld [vmem:[#allocation8 + $0xe8] sm:$0xff]  }
  0x78   :  { %648 = vmatpush1.bf16.msra.mxu0 %v1500_v32  ;;  %691 = vmatpush1.bf16.msra.mxu1 %v1502_v34  ;;  %v1736_v32 = vld [vmem:[#allocation8 + $0xd0] sm:$0xff]   ;;  %v1750_v46 = vld [vmem:[#allocation8 + $0xa8] sm:$0xff]  }
  0x79   :  { %649 = vmatprep.subr.bf16.mxu0 %v1509_v35  ;;  %692 = vmatprep.subr.bf16.mxu1 %v1511_v37  ;;  %v1738_v34 = vld [vmem:[#allocation8 + $0x90] sm:$0xff]   ;;  %v1739_v35 = vld [vmem:[#allocation8 + $0x58] sm:$0xff]  }
  0x7a   :  { %v1741_v37 = vld [vmem:[#allocation8 + $0x18] sm:$0xff]  }
  0x7c   :  { %650 = vmatpush1.bf16.msra.mxu0 %v1508_v41  ;;  %693 = vmatpush1.bf16.msra.mxu1 %v1510_v42  ;;  %v1745_v41 = vld [vmem:[#allocation8 + $0x20] sm:$0xff]  }
  0x7d   :  { %651 = vmatprep.subr.bf16.mxu0 %v1517_v43  ;;  %694 = vmatprep.subr.bf16.mxu1 %v1519_v45  ;;  %v1746_v42 = vld [vmem:[#allocation8 + $0xa0] sm:$0xff]   ;;  %v1747_v43 = vld [vmem:[#allocation8 + $0x68] sm:$0xff]  }
  0x7e   :  { %v1749_v45 = vld [vmem:[#allocation8 + $0x28] sm:$0xff]  }
  0x80   :  { %652 = vmatpush1.bf16.msra.mxu0 %v1516_v49  ;;  %695 = vmatpush1.bf16.msra.mxu1 %v1518_v52  ;;  %v1753_v49 = vld [vmem:[#allocation8 + $0x30] sm:$0xff]   ;;  %v1756_v52 = vld [vmem:[#allocation8 + $0xf8] sm:$0xff]  }
  0x81   :  { %653 = vmatprep.subr.bf16.mxu0 %v1525_v39  ;;  %696 = vmatprep.subr.bf16.mxu1 %v1527_v55  ;;  %v1757_v39 = vld [vmem:[#allocation8 + $0x38] sm:$0xff]   ;;  %v1760_v55 = vld [vmem:[#allocation8 + $0x1c0] sm:$0xff]  }
  0x84   :  { %654 = vmatpush1.bf16.msra.mxu0 %v1524_v56  ;;  %697 = vmatpush1.bf16.msra.mxu1 %v1526_v59  ;;  %v155_v56 = vlaneseq  ;;  %v2027_v59 = vld [vmem:[#allocation7] sm:$0xff] }
  0x85   :  { %655 = vmatprep.subr.bf16.mxu0 %v1533_v60  ;;  %698 = vmatprep.subr.bf16.mxu1 %v1535_v63 }
  0x86   :  { %v2024_v57 = vshrl.u32 %v155_v56, 7 }
  0x88   :  { %656 = vmatpush1.bf16.msra.mxu0 %v1532_v0  ;;  %699 = vmatpush1.bf16.msra.mxu1 %v1534_v3  ;;  %v157_v58 = vsub.s32 0, %v2024_v57  ;;  %v165_v60 = vsub.s32 2, %v2024_v57  ;;  %v161_v61 = vsub.s32 1, %v2024_v57  ;;  %v169_v62 = vsub.s32 3, %v2024_v57 }
  0x89   :  { %657 = vmatprep.subr.bf16.mxu0 %v1541_v4  ;;  %700 = vmatprep.subr.bf16.mxu1 %v1543_v7  ;;  %v177_v56 = vsub.s32 5, %v2024_v57 }
  0x8a   :  { %v158_v63 = vrot.slane %v2027_v59, %v157_v58  ;;  %v166_v0 = vrot.slane %v2027_v59, %v165_v60  ;;  %v162_v1 = vrot.slane %v2027_v59, %v161_v61  ;;  %v170_v2 = vrot.slane %v2027_v59, %v169_v62 }
  0x8c   :  { %658 = vmatpush1.bf16.msra.mxu0 %v1540_v8  ;;  %701 = vmatpush1.bf16.msra.mxu1 %v1542_v11 }
  0x8d   :  { %659 = vmatprep.subr.bf16.mxu0 %v1549_v12  ;;  %702 = vmatprep.subr.bf16.mxu1 %v1551_v15 }
  0x90   :  { %660 = vmatpush1.bf16.msra.mxu0 %v1548_v16  ;;  %703 = vmatpush1.bf16.msra.mxu1 %v1550_v17 }
  0x91   :  { %661 = vmatprep.subr.bf16.mxu0 %v1557_v18  ;;  %704 = vmatprep.subr.bf16.mxu1 %v1559_v19 }
  0x94   :  { %662 = vmatpush1.bf16.msra.mxu0 %v1556_v21  ;;  %705 = vmatpush1.bf16.msra.mxu1 %v1558_v24 }
  0x95   :  { %1628 = vmatprep.subr.bf16.mxu0 %v1727_v20  ;;  %1650 = vmatprep.subr.bf16.mxu1 %v1728_v23 }
  0x97   :  { %678 = vmatmul.mubr.bf16.vlgmr.msra.gmra.mrb[4].mxu0 %v2014_v22  ;;  %721 = vmatmul.mubr.bf16.vlgmr.msra.gmra.mrb[4].mxu1 %v2014_v22  ;;  %v1742_v22 = vld [vmem:[#allocation8 + $0x98] sm:$0xff]  }
  0x98   :  { %1629 = vmatpush3.bf16.msra.mxu0 %v1729_v25  ;;  %1651 = vmatpush3.bf16.msra.mxu1 %v1730_v26 }
  0x99   :  { %1630 = vmatprep.subr.bf16.mxu0 %v1731_v27  ;;  %1652 = vmatprep.subr.bf16.mxu1 %v1732_v28 }
  0x9c   :  { %1631 = vmatpush3.bf16.msra.mxu0 %v1733_v29  ;;  %1653 = vmatpush3.bf16.msra.mxu1 %v1734_v30 }
  0x9d   :  { %1632 = vmatprep.subr.bf16.mxu0 %v1735_v31  ;;  %1654 = vmatprep.subr.bf16.mxu1 %v1736_v32  ;;  %v1761_v31 = vld [vmem:[#allocation8 + $0x100] sm:$0xff]  }
  0xa0   :  { %1633 = vmatpush3.bf16.msra.mxu0 %v1737_v33  ;;  %1655 = vmatpush3.bf16.msra.mxu1 %v1738_v34  ;;  %v1762_v33 = vld [vmem:[#allocation8 + $0x180] sm:$0xff]   ;;  %v1763_v34 = vld [vmem:[#allocation8 + $0x148] sm:$0xff]  }
  0xa1   :  { %1634 = vmatprep.subr.bf16.mxu0 %v1739_v35  ;;  %1656 = vmatprep.subr.bf16.mxu1 %v1740_v36  ;;  %v1764_v35 = vld [vmem:[#allocation8 + $0x1c8] sm:$0xff]  }
  0xa2   :  { %v1765_v36 = vld [vmem:[#allocation8 + $0x108] sm:$0xff]  }
  0xa4   :  { %1635 = vmatpush3.bf16.msra.mxu0 %v1741_v37  ;;  %1657 = vmatpush3.bf16.msra.mxu1 %v1742_v22  ;;  %v1766_v37 = vld [vmem:[#allocation8 + $0x188] sm:$0xff]   ;;  %v1767_v22 = vld [vmem:[#allocation8 + $0x150] sm:$0xff]  }
  0xa5   :  { %1636 = vmatprep.subr.bf16.mxu0 %v1743_v38  ;;  %1658 = vmatprep.subr.bf16.mxu1 %v1744_v40  ;;  %v1768_v38 = vld [vmem:[#allocation8 + $0x1d0] sm:$0xff]  }
  0xa6   :  { %v1769_v40 = vld [vmem:[#allocation8 + $0x110] sm:$0xff]  }
  0xa8   :  { %1637 = vmatpush3.bf16.msra.mxu0 %v1745_v41  ;;  %1659 = vmatpush3.bf16.msra.mxu1 %v1746_v42  ;;  %v1770_v41 = vld [vmem:[#allocation8 + $0x190] sm:$0xff]   ;;  %v1771_v42 = vld [vmem:[#allocation8 + $0x158] sm:$0xff]  }
  0xa9   :  { %1638 = vmatprep.subr.bf16.mxu0 %v1747_v43  ;;  %1660 = vmatprep.subr.bf16.mxu1 %v1748_v44  ;;  %v1772_v43 = vld [vmem:[#allocation8 + $0x1d8] sm:$0xff]  }
  0xaa   :  { %v1773_v44 = vld [vmem:[#allocation8 + $0x118] sm:$0xff]  }
  0xac   :  { %1639 = vmatpush3.bf16.msra.mxu0 %v1749_v45  ;;  %1661 = vmatpush3.bf16.msra.mxu1 %v1750_v46  ;;  %v1774_v45 = vld [vmem:[#allocation8 + $0x198] sm:$0xff]   ;;  %v1775_v46 = vld [vmem:[#allocation8 + $0x160] sm:$0xff]  }
  0xad   :  { %1640 = vmatprep.subr.bf16.mxu0 %v1751_v47  ;;  %1662 = vmatprep.subr.bf16.mxu1 %v1752_v48  ;;  %v1776_v47 = vld [vmem:[#allocation8 + $0x1e0] sm:$0xff]  }
  0xae   :  { %v1777_v48 = vld [vmem:[#allocation8 + $0x120] sm:$0xff]  }
  0xb0   :  { %1641 = vmatpush3.bf16.msra.mxu0 %v1753_v49  ;;  %1663 = vmatpush3.bf16.msra.mxu1 %v1754_v50  ;;  %v1778_v49 = vld [vmem:[#allocation8 + $0x1a0] sm:$0xff]   ;;  %v1779_v50 = vld [vmem:[#allocation8 + $0x168] sm:$0xff]  }
  0xb1   :  { %1642 = vmatprep.subr.bf16.mxu0 %v1755_v51  ;;  %1664 = vmatprep.subr.bf16.mxu1 %v1756_v52  ;;  %v1780_v51 = vld [vmem:[#allocation8 + $0x1e8] sm:$0xff]  }
  0xb2   :  { %v1781_v52 = vld [vmem:[#allocation8 + $0x128] sm:$0xff]  }
  0xb4   :  { %1643 = vmatpush3.bf16.msra.mxu0 %v1757_v39  ;;  %1665 = vmatpush3.bf16.msra.mxu1 %v1758_v53  ;;  %v173_v39 = vsub.s32 4, %v2024_v57  ;;  %v1782_v53 = vld [vmem:[#allocation8 + $0x1a8] sm:$0xff]  }
  0xb5   :  { %1672 = vmatprep.subr.bf16.mxu0 %v1759_v54  ;;  %1694 = vmatprep.subr.bf16.mxu1 %v1760_v55  ;;  %v1783_v54 = vld [vmem:[#allocation8 + $0x170] sm:$0xff]   ;;  %v181_v55 = vsub.s32 6, %v2024_v57 }
 0x146   :  { %v593_v3 = vpop.f32.mrb[0].mxu0  ;;  %v636_v5 = vpop.f32.mrb[0].mxu1 }
 0x147   :  { %v594_v4 = vadd.f32 %v593_v3, %v158_v63  ;;  %v595_v6 = vpop.f32.mrb[1].mxu0  ;;  %v637_v7 = vadd.f32 %v636_v5, %v166_v0  ;;  %v638_v9 = vpop.f32.mrb[1].mxu1  ;;  %v1786_v3 = vld [vmem:[#allocation8 + $0x1b0] sm:$0xff]   ;;  %v182_v5 = vrot.slane %v2027_v59, %v181_v55 }
 0x148   :  { %v596_v8 = vadd.f32 %v595_v6, %v162_v1  ;;  %v597_v10 = vpop.f32.mrb[2].mxu0  ;;  %v639_v12 = vadd.f32 %v638_v9, %v170_v2  ;;  %v640_v14 = vpop.f32.mrb[2].mxu1  ;;  %v178_v6 = vrot.slane %v2027_v59, %v177_v56 }
 0x149   :  { %v731_v11 = vmax.f32 %v594_v4, 0.0  ;;  %v598_v13 = vadd.f32 %v597_v10, %v158_v63  ;;  %v599_v15 = vpop.f32.mrb[3].mxu0  ;;  %v733_v16 = vmax.f32 %v637_v7, 0.0  ;;  %v641_v17 = vadd.f32 %v640_v14, %v166_v0  ;;  %v642_v19 = vpop.f32.mrb[3].mxu1  ;;  %v1784_v63 = vld [vmem:[#allocation8 + $0x1f0] sm:$0xff]   ;;  %v1787_v4 = vld [vmem:[#allocation8 + $0x178] sm:$0xff]  }
 0x14a   :  { %v600_v18 = vadd.f32 %v599_v15, %v162_v1  ;;  %v643_v21 = vadd.f32 %v642_v19, %v170_v2  ;;  %v732_v23 = vmax.f32 %v596_v8, 0.0  ;;  %v734_v26 = vmax.f32 %v639_v12, 0.0  ;;  %v1785_v1 = vld [vmem:[#allocation8 + $0x130] sm:$0xff]   ;;  %v1788_v7 = vld [vmem:[#allocation8 + $0x1f8] sm:$0xff]  }
 0x14b   :  { %v739_v20 = vmax.f32 %v598_v13, 0.0  ;;  %v741_v24 = vmax.f32 %v641_v17, 0.0  ;;  %v185_v0 = vsub.s32 7, %v2024_v57  ;;  %v174_v2 = vrot.slane %v2027_v59, %v173_v39  ;;  %v1789_v10 = vld [vmem:[#allocation8 + $0x138] sm:$0xff]  }
 0x14c   :  { %v740_v25 = vmax.f32 %v600_v18, 0.0  ;;  %v742_v28 = vmax.f32 %v643_v21, 0.0  ;;  %v1790_v14 = vld [vmem:[#allocation8 + $0x1b8] sm:$0xff]  }
 0x14d   :  { %v747_v27 = vpack.c.bf16 %v739_v20, %v731_v11  ;;  %v749_v29 = vpack.c.bf16 %v741_v24, %v733_v16  ;;  %v186_v8 = vrot.slane %v2027_v59, %v185_v0 }
 0x14e   :  { %v748_v30 = vpack.c.bf16 %v740_v25, %v732_v23  ;;  %v750_v32 = vpack.c.bf16 %v742_v28, %v734_v26 }
 0x150   :  { %915 = vmatprep.mubr.bf16.mxu0 %v748_v30  ;;  %1084 = vmatprep.mubr.bf16.mxu1 %v750_v32 }
 0x151   :  { %916 = vmatmul.mubr.bf16.vlgmr.msra.gmra.mrb[8].mxu0 %v747_v27  ;;  %1085 = vmatmul.mubr.bf16.vlgmr.msra.gmra.mrb[8].mxu1 %v749_v29 }
 0x152   :  { %1673 = vmatpush3.bf16.msra.mxu0 %v1761_v31  ;;  %1695 = vmatpush3.bf16.msra.mxu1 %v1762_v33 }
 0x153   :  { %1674 = vmatprep.subr.bf16.mxu0 %v1763_v34  ;;  %1696 = vmatprep.subr.bf16.mxu1 %v1764_v35 }
 0x156   :  { %1675 = vmatpush3.bf16.msra.mxu0 %v1765_v36  ;;  %1697 = vmatpush3.bf16.msra.mxu1 %v1766_v37 }
 0x157   :  { %1676 = vmatprep.subr.bf16.mxu0 %v1767_v22  ;;  %1698 = vmatprep.subr.bf16.mxu1 %v1768_v38  ;;  %v1431_v38 = vld [vmem:[%s2082_s4] sm:$0xf]  ;;  %s1919_s4 = smov [#allocation10]  }
 0x158   :  { %s1474_s21 = sshll.u32 %s1919_s4, 4  ;;  %s1475_s21 = int_to_ptr.vmem [resolvable:$true] %s1474_s21 }
 0x159   :  { %s1879_s22 = scalar_lea.vmem %s1475_s21, 1024  ;;  %p1884_p5 = scmp.lt.s32.totalorder %s1475_s21, %s1475_s21 }
 0x15a   :  { %1677 = vmatpush3.bf16.msra.mxu0 %v1769_v40  ;;  %1699 = vmatpush3.bf16.msra.mxu1 %v1770_v41  ;;  %v1436_v41 = vrot.slane %v1431_v38, %v157_v58  ;;  %p1880_p4 = scmp.ne.s32.totalorder %s1475_s21, %s1879_s22  ;;  %p1885_p6 = scmp.lt.s32.totalorder %s1879_s22, %s1879_s22 }
 0x15b   :  { %1678 = vmatprep.subr.bf16.mxu0 %v1771_v42  ;;  %1700 = vmatprep.subr.bf16.mxu1 %v1772_v43 }
 0x15c   :  { %p1886_p7 = por %p1885_p6, %p1884_p5 }
 0x15e   :  { %1679 = vmatpush3.bf16.msra.mxu0 %v1773_v44  ;;  %1701 = vmatpush3.bf16.msra.mxu1 %v1774_v45  ;;  %v1440_v44 = vrot.slane %v1431_v38, %v161_v61  ;;  %v1444_v61 = vrot.slane %v1431_v38, %v165_v60  ;;  %p1887_p8 = pnand %p1886_p7, %p1880_p4 }
 0x15f   :  { %1680 = vmatprep.subr.bf16.mxu0 %v1775_v46  ;;  %1702 = vmatprep.subr.bf16.mxu1 %v1776_v47 }
 0x162   :  { %1681 = vmatpush3.bf16.msra.mxu0 %v1777_v48  ;;  %1703 = vmatpush3.bf16.msra.mxu1 %v1778_v49 }
 0x163   :  { %1682 = vmatprep.subr.bf16.mxu0 %v1779_v50  ;;  %1704 = vmatprep.subr.bf16.mxu1 %v1780_v51 }
 0x166   :  { %1683 = vmatpush3.bf16.msra.mxu0 %v1781_v52  ;;  %1705 = vmatpush3.bf16.msra.mxu1 %v1782_v53 }
 0x167   :  { %1684 = vmatprep.subr.bf16.mxu0 %v1783_v54  ;;  %1706 = vmatprep.subr.bf16.mxu1 %v1784_v63 }
 0x16a   :  { %v679_v9 = vpop.f32.mrb[4].mxu0  ;;  %1685 = vmatpush3.bf16.msra.mxu0 %v1785_v1  ;;  %v722_v12 = vpop.f32.mrb[4].mxu1  ;;  %1707 = vmatpush3.bf16.msra.mxu1 %v1786_v3  ;;  %v1448_v1 = vrot.slane %v1431_v38, %v169_v62 }
 0x16b   :  { %v680_v11 = vadd.f32 %v679_v9, %v174_v2  ;;  %v681_v13 = vpop.f32.mrb[5].mxu0  ;;  %1686 = vmatprep.subr.bf16.mxu0 %v1787_v4  ;;  %v723_v15 = vadd.f32 %v722_v12, %v182_v5  ;;  %v724_v17 = vpop.f32.mrb[5].mxu1  ;;  %1708 = vmatprep.subr.bf16.mxu1 %v1788_v7 }
 0x16c   :  { %v682_v16 = vadd.f32 %v681_v13, %v178_v6  ;;  %v683_v18 = vpop.f32.mrb[6].mxu0  ;;  %v725_v19 = vadd.f32 %v724_v17, %v186_v8  ;;  %v726_v21 = vpop.f32.mrb[6].mxu1 }
 0x16d   :  { %v684_v20 = vadd.f32 %v683_v18, %v174_v2  ;;  %v685_v23 = vpop.f32.mrb[7].mxu0  ;;  %v727_v24 = vadd.f32 %v726_v21, %v182_v5  ;;  %v728_v25 = vpop.f32.mrb[7].mxu1  ;;  %v735_v26 = vmax.f32 %v680_v11, 0.0  ;;  %v737_v29 = vmax.f32 %v723_v15, 0.0 }
 0x16e   :  { %v686_v59 = vadd.f32 %v685_v23, %v178_v6  ;;  %1687 = vmatpush3.bf16.msra.mxu0 %v1789_v10  ;;  %v729_v28 = vadd.f32 %v728_v25, %v186_v8  ;;  %1709 = vmatpush3.bf16.msra.mxu1 %v1790_v14  ;;  %v736_v30 = vmax.f32 %v682_v16, 0.0  ;;  %v738_v33 = vmax.f32 %v725_v19, 0.0 }
 0x16f   :  { %v743_v27 = vmax.f32 %v684_v20, 0.0  ;;  %v745_v31 = vmax.f32 %v727_v24, 0.0 }
 0x170   :  { %v744_v32 = vmax.f32 %v686_v59, 0.0  ;;  %v746_v35 = vmax.f32 %v729_v28, 0.0 }
 0x171   :  { %v751_v34 = vpack.c.bf16 %v743_v27, %v735_v26  ;;  %v753_v36 = vpack.c.bf16 %v745_v31, %v737_v29 }
 0x172   :  { %v752_v37 = vpack.c.bf16 %v744_v32, %v736_v30  ;;  %v754_v22 = vpack.c.bf16 %v746_v35, %v738_v33 }
 0x174   :  { %1253 = vmatprep.mubr.bf16.mxu0 %v752_v37  ;;  %1422 = vmatprep.mubr.bf16.mxu1 %v754_v22 }
 0x175   :  { %1254 = vmatmul.mubr.bf16.vlgmr.msra.gmra.mrb[12].mxu0 %v751_v34  ;;  %1423 = vmatmul.mubr.bf16.vlgmr.msra.gmra.mrb[12].mxu1 %v753_v36 }
 0x224   :  { %v1644_v40 = vpop.f32.mrb[8].mxu0  ;;  %v1666_v42 = vpop.f32.mrb[8].mxu1 }
 0x225   :  { %v1645_v43 = vpop.f32.mrb[9].mxu0  ;;  %v1667_v46 = vpop.f32.mrb[9].mxu1 }
 0x226   :  { %v1646_v45 = vadd.f32 %v1645_v43, %v1644_v40  ;;  %v1647_v47 = vpop.f32.mrb[10].mxu0  ;;  %v1668_v48 = vadd.f32 %v1667_v46, %v1666_v42  ;;  %v1669_v49 = vpop.f32.mrb[10].mxu1 }
 0x227   :  { %v1648_v50 = vpop.f32.mrb[11].mxu0  ;;  %v1670_v39 = vpop.f32.mrb[11].mxu1 }
 0x228   :  { %v1453_v51 = vadd.f32 %v1646_v45, %v1436_v41  ;;  %v1649_v52 = vadd.f32 %v1648_v50, %v1647_v47  ;;  %v1454_v53 = vadd.f32 %v1668_v48, %v1440_v44  ;;  %v1671_v54 = vadd.f32 %v1670_v39, %v1669_v49 }
 0x22a   :  { %1461 = vst [vmem:[#allocation10] sm:$0xff] %v1453_v51  ;;  %v1457_v55 = vadd.f32 %v1649_v52, %v1436_v41  ;;  %1462 = vst [vmem:[#allocation10 + $0x8] sm:$0xff] %v1454_v53  ;;  %v1458_v58 = vadd.f32 %v1671_v54, %v1440_v44 }
 0x22c   :  { %1465 = vst [vmem:[#allocation10 + $0x20] sm:$0xff] %v1457_v55  ;;  %1466 = vst [vmem:[#allocation10 + $0x28] sm:$0xff] %v1458_v58 }
 0x248   :  { %v1688_v56 = vpop.f32.mrb[12].mxu0  ;;  %v1710_v63 = vpop.f32.mrb[12].mxu1 }
 0x249   :  { %v1689_v0 = vpop.f32.mrb[13].mxu0  ;;  %v1711_v3 = vpop.f32.mrb[13].mxu1 }
 0x24a   :  { %v1690_v2 = vadd.f32 %v1689_v0, %v1688_v56  ;;  %v1691_v4 = vpop.f32.mrb[14].mxu0  ;;  %v1712_v5 = vadd.f32 %v1711_v3, %v1710_v63  ;;  %v1713_v6 = vpop.f32.mrb[14].mxu1 }
 0x24b   :  { %v1692_v7 = vpop.f32.mrb[15].mxu0  ;;  %v1714_v10 = vpop.f32.mrb[15].mxu1 }
 0x24c   :  { %v1455_v8 = vadd.f32 %v1690_v2, %v1444_v61  ;;  %v1693_v9 = vadd.f32 %v1692_v7, %v1691_v4  ;;  %v1456_v11 = vadd.f32 %v1712_v5, %v1448_v1  ;;  %v1715_v12 = vadd.f32 %v1714_v10, %v1713_v6 }
 0x24e   :  { %1463 = vst [vmem:[#allocation10 + $0x10] sm:$0xff] %v1455_v8  ;;  %v1459_v60 = vadd.f32 %v1693_v9, %v1444_v61  ;;  %1464 = vst [vmem:[#allocation10 + $0x18] sm:$0xff] %v1456_v11  ;;  %v1460_v13 = vadd.f32 %v1715_v12, %v1448_v1 }
 0x250   :  { %1467 = vst [vmem:[#allocation10 + $0x30] sm:$0xff] %v1459_v60  ;;  %1468 = vst [vmem:[#allocation10 + $0x38] sm:$0xff] %v1460_v13 }
 0x251   :  { %1890 = shalt.err (!%p1887_p8)
}
 0x252   :  { %s1891_s25 = scalar_lea.hbm %s2083_s5, 1024 }
 0x253   :  { %p1892_p9 = scmp.ne.s32.totalorder %s2083_s5, %s1891_s25  ;;  %p1895_p10 = scmp.lt.u32.totalorder %s1891_s25, %s2083_s5 }
 0x255   :  { %p1897_p11 = pnand %p1895_p10, %p1892_p9 }
 0x257   :  { %1900 = shalt.err (!%p1897_p11)
}
 0x258   :  { %1480 = dma.vmem_to_hbm [thread:$0]  %s1475_s21, 1024, %s2083_s5, [#allocation4], %s1910_s28, %s1910_s28, %s1911_s29  }
 0x259   :  { %1907 = dma.done.wait [#allocation4], 1024  }
 0x25a   :  { %1908 = vsyncadd [#allocation4], 4294966272 }
 0x25b   :  { %1484 = vsyncpa [#allocation3], 1 }
 0x25c   :  { %1485 = vsyncpa [#allocation6], 1 }
 0x25d   :  { %1486 = vsyncpa [#allocation9], 1 }
 0x25e   :  { %1487 = vsyncpa [#allocation4], 1 }

</bundles_post_ra>
